<compile_context>
chip_gen: v7x
topology: tpu7x:2x2x1
jax: 0.10.0
libtpu: 0.0.40
codegen_flags: <defaults>
</compile_context>

<pallas_src>
import jax
import jax.numpy as jnp
from jax.experimental import pallas as pl
from jax.experimental.pallas import tpu as pltpu


def _batch_tuned_lens_kernel(h_ref, w_ref, b_ref, gamma_ref, beta_ref, wu_ref,
                             out_ref, normed_ref):
    # h_ref:      (tn, D)   activations for the current (layer, row-tile)
    # w_ref:      (D, D)    lens weight for the current layer, laid out (dout, din)
    # b_ref:      (1, D)    lens bias for the current layer
    # gamma_ref:  (1, D)    final-LayerNorm scale (shared)
    # beta_ref:   (1, D)    final-LayerNorm shift (shared)
    # wu_ref:     (D, tv)   unembedding vocab tile (shared across layers / row-tiles)
    # out_ref:    (tn, tv)  logits tile
    # normed_ref: (tn, D)   scratch (W_U dtype): LayerNorm(new_h), reused over vocab tiles

    @pl.when(pl.program_id(2) == 0)
    def _():
        h = h_ref[...]
        w = w_ref[...]
        # h_out = h @ W^T  ('... din, dout din -> ... dout'); NT form, f32 accumulation
        # on the MXU, operands kept in native dtype.
        h_out = jax.lax.dot_general(
            h, w, dimension_numbers=(((1,), (1,)), ((), ())),
            preferred_element_type=jnp.float32)
        new_h = h.astype(jnp.float32) + h_out + b_ref[...].astype(jnp.float32)

        # final LayerNorm (eps = 1e-5), computed in f32.
        mean = jnp.mean(new_h, axis=-1, keepdims=True)
        xc = new_h - mean
        var = jnp.mean(xc * xc, axis=-1, keepdims=True)
        normed = xc * jax.lax.rsqrt(var + 1e-5)
        normed = (normed * gamma_ref[...].astype(jnp.float32)
                  + beta_ref[...].astype(jnp.float32))
        normed_ref[...] = normed.astype(normed_ref.dtype)

    # unembed tile: (tn, D) @ (D, tv); scratch already in W_U's dtype, f32 accumulate.
    logits = jnp.dot(normed_ref[...], wu_ref[...],
                     preferred_element_type=jnp.float32)
    out_ref[...] = logits.astype(out_ref.dtype)


def _pick_tile(total, preferred, align):
    """Largest t <= preferred with t % align == 0 and total % t == 0, else `total`."""
    if total <= preferred:
        return total
    t = (preferred // align) * align
    while t >= align:
        if total % t == 0:
            return t
        t -= align
    return total


def batch_tuned_lens(h, W_lens, b_lens, ln_gamma, ln_beta, W_U,
                     skip_unembed=False, max_tn=256, max_tv=1024):
    """h: (..., layers, dmodel) -> logits (..., layers, vocab)."""
    *lead, L, D = h.shape
    V = W_U.shape[1]

    if skip_unembed:
        # TODO(synk): skip_unembed branch kept in plain JAX (single small einsum, not the hot path).
        return h + jnp.einsum('...ld,led->...le', h, W_lens) + b_lens

    N = 1
    for s in lead:
        N *= s

    tn = _pick_tile(N, max_tn, 8)
    tv = _pick_tile(V, max_tv, 128)
    n_vb = V // tv

    # Transpose-free layouts when lane-aligned; otherwise (L, N, ...) fallback.
    h_flat_ok = (D % 128 == 0) or (L == 1)
    out_flat_ok = (tv % 128 == 0) or (L == 1)

    if h_flat_ok:
        h_in = h.reshape(N, L * D)                                   # free reshape
        h_spec = pl.BlockSpec((tn, D), lambda l, n, v: (n, l))
    else:
        h_in = jnp.moveaxis(h.reshape(N, L, D), 1, 0)                # (L, N, D)
        h_spec = pl.BlockSpec((None, tn, D), lambda l, n, v: (l, n, 0))

    if out_flat_ok:
        out_shape = jax.ShapeDtypeStruct((N, L * V), h.dtype)
        out_spec = pl.BlockSpec((tn, tv), lambda l, n, v: (n, l * n_vb + v))
    else:
        out_shape = jax.ShapeDtypeStruct((L, N, V), h.dtype)
        out_spec = pl.BlockSpec((None, tn, tv), lambda l, n, v: (l, n, v))

    b2 = b_lens.reshape(L, 1, D)
    gamma2 = ln_gamma.reshape(1, D)
    beta2 = ln_beta.reshape(1, D)

    # VMEM budget: double-buffered tiles + scratch; raise the scoped limit if needed.
    isz = jnp.dtype(h.dtype).itemsize
    wsz = jnp.dtype(W_lens.dtype).itemsize
    usz = jnp.dtype(W_U.dtype).itemsize
    vmem_est = (2 * (tn * D * isz + D * D * wsz + 3 * D * wsz
                     + D * tv * usz + tn * tv * isz)
                + tn * D * usz)
    cp_kwargs = dict(dimension_semantics=("parallel", "parallel", "arbitrary"))
    if vmem_est > (32 << 20):
        cp_kwargs["vmem_limit_bytes"] = int(min(vmem_est + (4 << 20), 100 << 20))

    out = pl.pallas_call(
        _batch_tuned_lens_kernel,
        out_shape=out_shape,
        grid_spec=pltpu.PrefetchScalarGridSpec(
            num_scalar_prefetch=0,
            grid=(L, N // tn, V // tv),
            in_specs=[
                h_spec,                                                  # h      (layer, row-tile)
                pl.BlockSpec((None, D, D), lambda l, n, v: (l, 0, 0)),   # W_lens (per layer)
                pl.BlockSpec((None, 1, D), lambda l, n, v: (l, 0, 0)),   # b_lens (per layer)
                pl.BlockSpec((1, D), lambda l, n, v: (0, 0)),            # ln gamma (shared)
                pl.BlockSpec((1, D), lambda l, n, v: (0, 0)),            # ln beta  (shared)
                pl.BlockSpec((D, tv), lambda l, n, v: (0, v)),           # W_U vocab tile
            ],
            out_specs=out_spec,
            scratch_shapes=[pltpu.VMEM((tn, D), W_U.dtype)],
        ),
        compiler_params=pltpu.CompilerParams(**cp_kwargs),
    )(h_in, W_lens, b2, gamma2, beta2, W_U)

    if out_flat_ok:
        return out.reshape(*lead, L, V)
    return jnp.moveaxis(out, 0, 1).reshape(*lead, L, V)


def _reference(h, W_lens, b_lens, ln_gamma, ln_beta, W_U):
    h_out = jnp.einsum('...ld,led->...le', h, W_lens) + b_lens
    new_h = h + h_out
    mean = jnp.mean(new_h, axis=-1, keepdims=True)
    xc = new_h - mean
    var = jnp.mean(xc * xc, axis=-1, keepdims=True)
    normed = xc * jax.lax.rsqrt(var + 1e-5) * ln_gamma + ln_beta
    return jnp.einsum('...ld,dv->...lv', normed, W_U)


if __name__ == "__main__":
    key = jax.random.PRNGKey(0)

    def make_inputs(B, S, L, D, V):
        k_h, k_w, k_b, k_g, k_be, k_u = jax.random.split(key, 6)
        h = jax.random.normal(k_h, (B, S, L, D), dtype=jnp.float32)
        W_lens = 0.02 * jax.random.normal(k_w, (L, D, D), dtype=jnp.float32)
        b_lens = 0.1 * jax.random.normal(k_b, (L, D), dtype=jnp.float32)
        ln_gamma = 1.0 + 0.1 * jax.random.normal(k_g, (D,), dtype=jnp.float32)
        ln_beta = 0.1 * jax.random.normal(k_be, (D,), dtype=jnp.float32)
        W_U = 0.05 * jax.random.normal(k_u, (D, V), dtype=jnp.float32)
        return h, W_lens, b_lens, ln_gamma, ln_beta, W_U

    # Config 1: lane-aligned D/V -> exercises the (L, N//tn, V//tv) tiled grid, the
    # v==0 scratch reuse, and the transpose-free flat input/output layouts.
    B, S, L, D, V = 2, 8, 4, 128, 256
    args = make_inputs(B, S, L, D, V)
    out = jax.block_until_ready(batch_tuned_lens(*args, max_tn=8, max_tv=128))
    ref = _reference(*args)
    assert out.shape == (B, S, L, V), out.shape
    err = float(jnp.max(jnp.abs(out - ref)))
    assert jnp.allclose(out, ref, atol=1e-2, rtol=1e-2), f"mismatch (max abs err {err})"

    # Config 2: tiny non-lane-aligned shapes -> exercises the (L, N, ...) fallback layout.
    args2 = make_inputs(2, 8, 4, 32, 64)
    out2 = jax.block_until_ready(batch_tuned_lens(*args2))
    ref2 = _reference(*args2)
    assert out2.shape == (2, 8, 4, 64), out2.shape
    err2 = float(jnp.max(jnp.abs(out2 - ref2)))
    assert jnp.allclose(out2, ref2, atol=1e-2, rtol=1e-2), f"mismatch (max abs err {err2})"

    print("KERNEL_OK")
</pallas_src>

<mosaic_0001>
module attributes {stable_mosaic.version = 11 : i64} {
  func.func @_batch_tuned_lens_kernel(%arg0: i32, %arg1: i32, %arg2: i32, %arg3: memref<8x128xf32, #tpu.memory_space<vmem>>, %arg4: memref<1x128x128xf32, #tpu.memory_space<vmem>>, %arg5: memref<1x1x128xf32, #tpu.memory_space<vmem>>, %arg6: memref<1x128xf32, #tpu.memory_space<vmem>>, %arg7: memref<1x128xf32, #tpu.memory_space<vmem>>, %arg8: memref<128x128xf32, #tpu.memory_space<vmem>>, %arg9: memref<8x128xf32, #tpu.memory_space<vmem>>, %arg10: memref<8x128xf32, #tpu.memory_space<vmem>>) attributes {dimension_semantics = [#tpu.dimension_semantics<parallel>, #tpu.dimension_semantics<parallel>, #tpu.dimension_semantics<arbitrary>], iteration_bounds = array<i64: 4, 2, 2>, scalar_prefetch = 0 : i64, scratch_operands = 1 : i64, tpu.core_type = #tpu.core_type<tc>, window_params = [{transform_indices = @transform_0, window_bounds = array<i64: 8, 128>}, {transform_indices = @transform_1, window_bounds = array<i64: 1, 128, 128>}, {transform_indices = @transform_2, window_bounds = array<i64: 1, 1, 128>}, {pipeline_mode = #tpu.pipeline_mode<synchronous>, transform_indices = @transform_3, window_bounds = array<i64: 1, 128>}, {pipeline_mode = #tpu.pipeline_mode<synchronous>, transform_indices = @transform_4, window_bounds = array<i64: 1, 128>}, {transform_indices = @transform_5, window_bounds = array<i64: 128, 128>}, {transform_indices = @transform_6, window_bounds = array<i64: 8, 128>}]} {
    %c0_i32 = arith.constant 0 : i32
    %0 = arith.cmpi eq, %arg2, %c0_i32 : i32
    %1 = arith.extui %0 : i1 to i32
    %c0_i32_0 = arith.constant 0 : i32
    %2 = arith.cmpi ne, %1, %c0_i32_0 : i32
    scf.if %2 {
      %c0_6 = arith.constant 0 : index
      %c0_7 = arith.constant 0 : index
      %7 = vector.load %arg3[%c0_6, %c0_7] : memref<8x128xf32, #tpu.memory_space<vmem>>, vector<8x128xf32>
      %c0_8 = arith.constant 0 : index
      %c0_9 = arith.constant 0 : index
      %c0_10 = arith.constant 0 : index
      %8 = vector.load %arg4[%c0_8, %c0_9, %c0_10] : memref<1x128x128xf32, #tpu.memory_space<vmem>>, vector<1x128x128xf32>
      %9 = vector.shape_cast %8 : vector<1x128x128xf32> to vector<128x128xf32>
      %cst_11 = arith.constant dense<0.000000e+00> : vector<8x128xf32>
      %10 = tpu.matmul %7, %9, %cst_11 {dimension_numbers = #tpu.dot_dimension_numbers<[1], [1], [0], [0], [0, 0, 1, 0], [], []>} : vector<8x128xf32>, vector<128x128xf32>, vector<8x128xf32> -> vector<8x128xf32>
      %11 = arith.addf %7, %10 : vector<8x128xf32>
      %c0_12 = arith.constant 0 : index
      %c0_13 = arith.constant 0 : index
      %c0_14 = arith.constant 0 : index
      %12 = vector.load %arg5[%c0_12, %c0_13, %c0_14] : memref<1x1x128xf32, #tpu.memory_space<vmem>>, vector<1x1x128xf32>
      %13 = vector.shape_cast %12 : vector<1x1x128xf32> to vector<1x128xf32>
      %14 = vector.broadcast %13 : vector<1x128xf32> to vector<8x128xf32>
      %15 = arith.addf %11, %14 : vector<8x128xf32>
      %cst_15 = arith.constant dense<0.000000e+00> : vector<8xf32>
      %16 = vector.multi_reduction <add>, %15, %cst_15 [1] : vector<8x128xf32> to vector<8xf32>
      %17 = vector.shape_cast %16 : vector<8xf32> to vector<8x1xf32>
      %cst_16 = arith.constant 1.280000e+02 : f32
      %18 = vector.broadcast %cst_16 : f32 to vector<8x1xf32>
      %19 = arith.divf %17, %18 : vector<8x1xf32>
      %20 = vector.broadcast %19 : vector<8x1xf32> to vector<8x128xf32>
      %21 = arith.subf %15, %20 : vector<8x128xf32>
      %22 = arith.mulf %21, %21 : vector<8x128xf32>
      %cst_17 = arith.constant dense<0.000000e+00> : vector<8xf32>
      %23 = vector.multi_reduction <add>, %22, %cst_17 [1] : vector<8x128xf32> to vector<8xf32>
      %24 = vector.shape_cast %23 : vector<8xf32> to vector<8x1xf32>
      %cst_18 = arith.constant 1.280000e+02 : f32
      %25 = vector.broadcast %cst_18 : f32 to vector<8x1xf32>
      %26 = arith.divf %24, %25 : vector<8x1xf32>
      %cst_19 = arith.constant 9.99999974E-6 : f32
      %27 = vector.broadcast %cst_19 : f32 to vector<8x1xf32>
      %28 = arith.addf %26, %27 : vector<8x1xf32>
      %29 = math.rsqrt %28 : vector<8x1xf32>
      %30 = vector.broadcast %29 : vector<8x1xf32> to vector<8x128xf32>
      %31 = arith.mulf %21, %30 : vector<8x128xf32>
      %c0_20 = arith.constant 0 : index
      %c0_21 = arith.constant 0 : index
      %32 = vector.load %arg6[%c0_20, %c0_21] : memref<1x128xf32, #tpu.memory_space<vmem>>, vector<1x128xf32>
      %33 = vector.broadcast %32 : vector<1x128xf32> to vector<8x128xf32>
      %34 = arith.mulf %31, %33 : vector<8x128xf32>
      %c0_22 = arith.constant 0 : index
      %c0_23 = arith.constant 0 : index
      %35 = vector.load %arg7[%c0_22, %c0_23] : memref<1x128xf32, #tpu.memory_space<vmem>>, vector<1x128xf32>
      %36 = vector.broadcast %35 : vector<1x128xf32> to vector<8x128xf32>
      %37 = arith.addf %34, %36 : vector<8x128xf32>
      %c0_24 = arith.constant 0 : index
      %c0_25 = arith.constant 0 : index
      %38 = vector.load %arg10[%c0_24, %c0_25] : memref<8x128xf32, #tpu.memory_space<vmem>>, vector<8x128xf32>
      tpu.vector_store %arg10[%c0_24, %c0_25], %37 {strides = array<i32>} : memref<8x128xf32, #tpu.memory_space<vmem>>, vector<8x128xf32>,
    } else {
    }
    %c0 = arith.constant 0 : index
    %c0_1 = arith.constant 0 : index
    %3 = vector.load %arg10[%c0, %c0_1] : memref<8x128xf32, #tpu.memory_space<vmem>>, vector<8x128xf32>
    %c0_2 = arith.constant 0 : index
    %c0_3 = arith.constant 0 : index
    %4 = vector.load %arg8[%c0_2, %c0_3] : memref<128x128xf32, #tpu.memory_space<vmem>>, vector<128x128xf32>
    %cst = arith.constant dense<0.000000e+00> : vector<8x128xf32>
    %5 = tpu.matmul %3, %4, %cst {dimension_numbers = #tpu.dot_dimension_numbers<[1], [0], [0], [1], [0, 0, 1, 1], [], []>} : vector<8x128xf32>, vector<128x128xf32>, vector<8x128xf32> -> vector<8x128xf32>
    %c0_4 = arith.constant 0 : index
    %c0_5 = arith.constant 0 : index
    %6 = vector.load %arg9[%c0_4, %c0_5] : memref<8x128xf32, #tpu.memory_space<vmem>>, vector<8x128xf32>
    tpu.vector_store %arg9[%c0_4, %c0_5], %5 {strides = array<i32>} : memref<8x128xf32, #tpu.memory_space<vmem>>, vector<8x128xf32>,
    return
  }
  func.func @transform_0(%arg0: i32, %arg1: i32, %arg2: i32) -> (i32, i32) {
    %c0_i32 = arith.constant 0 : i32
    return %arg1, %arg0 : i32, i32
  }
  func.func @transform_1(%arg0: i32, %arg1: i32, %arg2: i32) -> (i32, i32, i32) {
    %c0_i32 = arith.constant 0 : i32
    %c0_i32_0 = arith.constant 0 : i32
    %c0_i32_1 = arith.constant 0 : i32
    return %arg0, %c0_i32, %c0_i32_0 : i32, i32, i32
  }
  func.func @transform_2(%arg0: i32, %arg1: i32, %arg2: i32) -> (i32, i32, i32) {
    %c0_i32 = arith.constant 0 : i32
    %c0_i32_0 = arith.constant 0 : i32
    %c0_i32_1 = arith.constant 0 : i32
    return %arg0, %c0_i32, %c0_i32_0 : i32, i32, i32
  }
  func.func @transform_3(%arg0: i32, %arg1: i32, %arg2: i32) -> (i32, i32) {
    %c0_i32 = arith.constant 0 : i32
    %c0_i32_0 = arith.constant 0 : i32
    %c0_i32_1 = arith.constant 0 : i32
    return %c0_i32, %c0_i32_0 : i32, i32
  }
  func.func @transform_4(%arg0: i32, %arg1: i32, %arg2: i32) -> (i32, i32) {
    %c0_i32 = arith.constant 0 : i32
    %c0_i32_0 = arith.constant 0 : i32
    %c0_i32_1 = arith.constant 0 : i32
    return %c0_i32, %c0_i32_0 : i32, i32
  }
  func.func @transform_5(%arg0: i32, %arg1: i32, %arg2: i32) -> (i32, i32) {
    %c0_i32 = arith.constant 0 : i32
    %c0_i32_0 = arith.constant 0 : i32
    return %c0_i32, %arg2 : i32, i32
  }
  func.func @transform_6(%arg0: i32, %arg1: i32, %arg2: i32) -> (i32, i32) {
    %c2_i32 = arith.constant 2 : i32
    %0 = arith.muli %arg0, %c2_i32 : i32
    %1 = arith.addi %0, %arg2 : i32
    %c0_i32 = arith.constant 0 : i32
    return %arg1, %1 : i32, i32
  }
}

</mosaic_0001>

<bundles_post_ra>
// kernel: tpu_custom_call.1
= control target key start
LH: loop header
LB: loop body
LE: loop exit
PB: predicated region body
PF: predicated region fallthrough
CT: control target
= control target key end

     0   :  { %s2000_s0 = inlined_call_operand.hbm [shape: f32[16,512], index: 0, kind: input, shape index: {}]   ;;  %s2001_s1 = inlined_call_operand.hbm [shape: f32[4,128,128], index: 1, kind: input, shape index: {}]   ;;  %s2002_s2 = inlined_call_operand.vmem [shape: f32[4,1,128], index: 2, kind: input, shape index: {}]   ;;  %s2003_s3 = inlined_call_operand.vmem [shape: f32[1,128], index: 3, kind: input, shape index: {}]   ;;  %s2004_s4 = inlined_call_operand.vmem [shape: f32[1,128], index: 4, kind: input, shape index: {}]   ;;  %s2005_s5 = inlined_call_operand.hbm [shape: f32[128,256], index: 5, kind: input, shape index: {}]   ;;  %s2006_s6 = inlined_call_operand.hbm [shape: f32[16,1024], index: 6, kind: output, shape index: {}]  }
   0x1   :  { %2034 = sst [smem:[#allocation29_spill]] %s2000_s0 }
   0x2   :  { %2035 = sst [smem:[#allocation30_spill]] %s2001_s1 }
   0x3   :  { %2036 = sst [smem:[#allocation31_spill]] %s2002_s2 }
   0x4   :  { %2037 = sst [smem:[#allocation32_spill]] %s2003_s3 }
   0x5   :  { %2038 = sst [smem:[#allocation33_spill]] %s2004_s4 }
   0x6   :  { %2039 = sst [smem:[#allocation34_spill]] %s2005_s5 }
   0x7   :  { %2040 = sst [smem:[#allocation35_spill]] %s2006_s6 }
   0x8   :  { %11 = vsyncpa [#allocation4], 0 }
   0x9   :  { %13 = vsyncpa [#allocation4 + $0x1], 0 }
   0xa   :  { %14 = vsyncpa [#allocation7], 0 }
   0xb   :  { %16 = vsyncpa [#allocation7 + $0x1], 0 }
   0xc   :  { %17 = vsyncpa [#allocation5], 0 }
   0xd   :  { %19 = vsyncpa [#allocation5 + $0x1], 0  ;;  %s1471_s21 = smov 0   ;;  %s1473_s22 = smov 0  }
   0xe   :  { %s1475_s23 = smov 0   ;;  %s1477_s24 = smov 0  }
   0xf   :  { %2041 = sst [smem:[#allocation14_spill]] %s1477_s24  ;;  %s1479_s25 = smov 0  }
  0x10   :  { %s1481_s26 = smov 0   ;;  %s1483_s27 = smov 0  }
  0x11   :  { %s1485_s28 = smov 0   ;;  %s1487_s29 = smov 0  }
  0x12   :  { %s1489_s30 = smov 0   ;;  %s1491_s7 = smov 0  }
  0x13   :  { %s1493_s8 = smov 0   ;;  %s1495_s9 = smov 0  }
  0x14   :  { %s1497_s10 = smov 0   ;;  %s1499_s11 = smov 0  }
  0x15   :  { %s1501_s12 = smov 0   ;;  %s1503_s13 = smov 0  }
  0x16   :  { %s1505_s14 = smov 0   ;;  %s1507_s15 = smov 0  }
  0x17 LB: > { %s2043_s24 = sld [smem:[#allocation14_spill]]  ;;  %2045 = sst [smem:[#allocation15_spill]] %s1389_s7  ;;  %s1421_s15 = sphi %s1507_s15, %s25_s15   ;;  %s1417_s14 = sphi %s1505_s14, %s2116_s14   ;;  %s1413_s13 = sphi %s1503_s13, %s2130_s13   ;;  %s1409_s12 = sphi %s1501_s12, %s2129_s12   ;;  %s1405_s11 = sphi %s1499_s11, %s2128_s11   ;;  %s1401_s10 = sphi %s1497_s10, %s2127_s10   ;;  %s1397_s9 = sphi %s1495_s9, %s2126_s9   ;;  %s1393_s8 = sphi %s1493_s8, %s2125_s8   ;;  %s1389_s7 = sphi %s1491_s7, %s2124_s7   ;;  %s1385_s30 = sphi %s1489_s30, %s2123_s30   ;;  %s1381_s29 = sphi %s1487_s29, %s2122_s29   ;;  %s1377_s28 = sphi %s1485_s28, %s2121_s28   ;;  %s1373_s27 = sphi %s1483_s27, %s2108_s27   ;;  %s1369_s26 = sphi %s1481_s26, %s2120_s26   ;;  %s1365_s25 = sphi %s1479_s25, %s2119_s25   ;;  %s1357_s23 = sphi %s1475_s23, %s2117_s23   ;;  %s1353_s22 = sphi %s1473_s22, %s2115_s22   ;;  %s1349_s21 = sphi %s1471_s21, %s2113_s21  }
  0x18   : > { %2044 = sst [smem:[#allocation14_spill]] %s1377_s28  ;;  %p2026_p0 = scmp.eq.s32.totalorder %s1421_s15, 0 }
  0x19   : > { %2046 = sst [smem:[#allocation16_spill]] %s1397_s9  ;;  %p86_p1 = scmp.ne.s32.totalorder %s1381_s29, %s1377_s28 }
  0x1a   : > { %2047 = sst [smem:[#allocation17_spill]] %s1401_s10  ;;  %p2008_p3 = scmp.lt.s32.totalorder %s1421_s15, 16 }
  0x1b   : > { %2048 = sst [smem:[#allocation18_spill]] %s1405_s11  ;;  %p88_p4 = por %p86_p1, %p2026_p0 }
  0x1c   : > { %2049 = sst [smem:[#allocation19_spill]] %s1417_s14  ;;  %s268_s17 = sand.u32 1, %s1421_s15  }
  0x1d   : > { %s270_s18 = sand.u32 1, %s1381_s29   ;;  %s797_s20 = sshll.u32 %s1417_s14, 11 }
  0x1e   : > { %s777_s19 = sshll.u32 %s270_s18, 7  ;;  %s2050_s1 = sld [smem:[#allocation30_spill]] }
  0x1f   : > { %s272_s3 = scalar_lea.vmem [#allocation6], %s777_s19  ;;  %p1585_p5 = pnand %p2008_p3, %p88_p4 }
  0x20   : > { %s279_s16 = sshll.u32 %s272_s3, 4  ;;  %s1591_s18 = scalar_lea.sflag [#allocation7], %s268_s17  ;;  %s1589_s16 = int_to_ptr.vmem [resolvable:$true] %s279_s16 }
  0x21   : > { %2052 = sst [smem:[#allocation20_spill]] %s1591_s18  ;;  %p1139_p7 = pneg %p1585_p5 }
  0x24   : > { %s1581_s4 = scalar_lea.hbm %s2050_s1, %s797_s20  ;;  %s1142_s19 = scalar_lea.hbm %s2050_s1, 8192 }
  0x25   : > { %s1137_s6 = scalar_lea.hbm %s1581_s4, 2048  ;;  %p1143_p10 = scmp.lt.u32.totalorder %s1581_s4, %s2050_s1 }
  0x26   : > { %p1138_p6 = scmp.ne.s32.totalorder %s1581_s4, %s1137_s6  ;;  %p1144_p11 = scmp.lt.u32.totalorder %s1142_s19, %s1137_s6 }
  0x27   : > { %p1146_p13 = scmp.lt.u32.totalorder %s1137_s6, %s1581_s4 }
  0x28   : > { %p1140_p8 = pnand %p1139_p7, %p1138_p6  ;;  %p1145_p12 = por %p1144_p11, %p1143_p10 }
  0x2a   : > { %p1141_p9 = pneg %p1140_p8  ;;  %p1147_p1 = por %p1146_p13, %p1145_p12 }
  0x2c   : > { %p1148_p4 = pnand %p1147_p1, %p1141_p9 }
  0x2e   : > { %1151 = shalt.err (!%p1148_p4)
}
  0x2f   : > { %s1152_s17 = scalar_lea.vmem %s1589_s16, 2048  ;;  %s1423_s3 = smov [#allocation6]  }
  0x30   : > { %p1153_p6 = scmp.ne.s32.totalorder %s1589_s16, %s1152_s17  ;;  %s1157_s10 = sshll.u32 %s1423_s3, 4  ;;  %s1158_s10 = int_to_ptr.vmem [resolvable:$false] %s1157_s10 }
  0x31   : > { %s1159_s2 = scalar_lea.vmem %s1158_s10, 4096  ;;  %p1160_p2 = scmp.lt.s32.totalorder %s1589_s16, %s1158_s10 }
  0x32   : > { %p1155_p8 = pnand %p1153_p6, %p1139_p7  ;;  %p1161_p10 = scmp.lt.s32.totalorder %s1159_s2, %s1152_s17 }
  0x34   : > { %p1156_p3 = pneg %p1155_p8  ;;  %p1162_p11 = por %p1161_p10, %p1160_p2 }
  0x36   : > { %p1163_p12 = pnand %p1162_p11, %p1156_p3 }
  0x38   : > { %1166 = shalt.err (!%p1163_p12)
}
  0x39   : > { %s2009_s6 = smov 128   ;;  %s2010_s19 = smov 8  }
  0x3a   : > { %964 = dma.hbm_to_vmem [thread:$0]  (!%p1585_p5), %s1581_s4, 2048, %s1589_s16, %s1591_s18, %s2009_s6, %s2009_s6, %s2010_s19  }
  0x3b   : > { %p782_p2 = scmp.ge.s32.totalorder %s1421_s15, 1  ;;  %p313_p3 = scmp.lt.s32.totalorder %s1421_s15, 17 }
  0x3c   : > { %s1629_s17 = sadd.s32 4294967295, %s1421_s15   ;;  %s37_s10 = sadd.s32 1, %s1409_s12 }
  0x3d   : > { %p1624_p7 = pnand %p782_p2, %p313_p3  ;;  %p38_p9 = scmp.ge.s32.totalorder %s37_s10, 2 }
  0x3e   : > { %s40_s9 = sadd.s32 1, %s1413_s13  ;;  %s44_s4 = sadd.s32 1, %s1417_s14 }
  0x3f   : > { %s2053_s20 = scalar_select %p1624_p7, 1, 0 }
  0x40   : > { %s53_s16 = sadd.s32 1, %s1393_s8  ;;  %s2132_s10 = smov (%p38_p9, %s37_s10), 0 }
  0x41   : > { %2054 = sst [smem:[#allocation21_spill]] %s2053_s20  ;;  %s2134_s9 = smov (!%p38_p9, %s40_s9), %s1413_s13 }
  0x42   : > { %2055 = sst [smem:[#allocation22_spill]] %s2132_s10  ;;  %p60_p5 = scmp.ne.s32.totalorder %s1393_s8, %s1389_s7 }
  0x43   : > { %p66_p13 = scmp.ne.s32.totalorder %s1389_s7, %s1385_s30  ;;  %p42_p1 = scmp.ge.s32.totalorder %s2134_s9, 2 }
  0x44   : > { %p67_p4 = scmp.eq.s32.totalorder %s1629_s17, 0  ;;  %p1646_p6 = por %p2026_p0, %p60_p5 }
  0x45   : > { %s170_s6 = ssub.s32 %s1409_s12, %s2132_s10  ;;  %s2136_s9 = smov (%p42_p1, %s2134_s9), 0 }
  0x46   : > { %2057 = sst [smem:[#allocation23_spill]] %s2136_s9  ;;  %s2138_s4 = smov (!%p42_p1, %s44_s4), %s1417_s14 }
  0x47   : > { %s48_s19 = ssub.s32 %s1413_s13, %s2136_s9  ;;  %p1657_p8 = por %p67_p4, %p66_p13 }
  0x48   : > { %p46_p10 = scmp.ge.s32.totalorder %s2138_s4, 4  ;;  %p2060_p11 = scmp.ne.s32.totalorder %s1377_s28, %s1373_s27 }
  0x49   : > { %s2058_s30 = scalar_select %p1657_p8, 1, 0 }
  0x4a   : > { %p1664_p12 = por %p2060_p11, %p67_p4  ;;  %p1668_p2 = scmp.eq.s32.totalorder %s170_s6, 0 }
  0x4b   : > { %2059 = sst [smem:[#allocation24_spill]] %s2058_s30  ;;  %p186_p3 = scmp.ne.s32.totalorder %s1365_s25, %s2043_s24 }
  0x4c   : > { %s2061_s3 = scalar_select %p1664_p12, 1, 0 }
  0x4d   : > { %s2140_s4 = smov (%p46_p10, %s2138_s4), 0  ;;  %p1676_p9 = por %p186_p3, %p67_p4 }
  0x4e   : > { %2062 = sst [smem:[#allocation25_spill]] %s2061_s3  ;;  %s770_s27 = sshll.u32 %s1417_s14, 1 }
  0x4f   : > { %2064 = sst [smem:[#allocation26_spill]] %s2140_s4  ;;  %s49_s11 = ssub.s32 %s1417_s14, %s2140_s4 }
  0x50   : > { %s2065_s9 = scalar_select %p1676_p9, 1, 0 }
  0x51   : > { %s197_s6 = sadd.s32 %s1409_s12, %s770_s27  ;;  %s50_s3 = sor.u32 %s49_s11, %s48_s19 }
  0x52   : > { %2066 = sst [smem:[#allocation27_spill]] %s2065_s9  ;;  %p77_p5 = scmp.eq.s32.totalorder %s49_s11, 0 }
  0x53   : > { %p51_p13 = scmp.eq.s32.totalorder %s50_s3, 0  ;;  %s771_s24 = sshll.u32 %s2140_s4, 1 }
  0x54   : > { %s2067_s28 = sadd.s32 1, %s1381_s29  ;;  %s199_s9 = sadd.s32 %s771_s24, %s2132_s10 }
  0x55   : > { %s1688_s30 = scalar_select %p77_p5, %s1381_s29, %s2067_s28  }
  0x56   : > { %s1691_s7 = scalar_select %p51_p13, %s1393_s8, %s53_s16  }
  0x57   : > { %s205_s20 = sadd.s32 1, %s1357_s23  ;;  %s201_s18 = ssub.s32 %s197_s6, %s199_s9 }
  0x58   : > { %2068 = sst [smem:[#allocation28_spill]] %s1691_s7  ;;  %p215_p1 = scmp.ne.s32.totalorder %s1357_s23, %s1353_s22 }
  0x59   : > { %s202_s5 = sor.u32 %s201_s18, %s48_s19  ;;  %p216_p4 = scmp.eq.s32.totalorder %s1629_s17, 15 }
  0x5a   : > { %p203_p10 = scmp.eq.s32.totalorder %s202_s5, 0  ;;  %p221_p11 = scmp.ne.s32.totalorder %s1353_s22, %s1349_s21 }
  0x5b   : > { %p1700_p3 = por %p216_p4, %p215_p1  ;;  %s2070_s28 = sadd.s32 4294967294, %s1421_s15  }
  0x5c   : > { %p222_p5 = scmp.eq.s32.totalorder %s2070_s28, 15  ;;  %s248_s9 = sand.u32 1, %s1393_s8  }
  0x5d   : > { %s2069_s11 = scalar_select %p1700_p3, 1, 0 }
  0x5e   : > { %s1707_s3 = scalar_select %p203_p10, %s1357_s23, %s205_s20  }
  0x5f   : > { %p1709_p13 = por %p222_p5, %p221_p11  ;;  %s774_s18 = sshll.u32 %s248_s9, 3 }
  0x60   : > { %s775_s19 = sshll.u32 %s1413_s13, 2  ;;  %s252_s6 = scalar_lea.vmem [#allocation3], %s774_s18 }
  0x61   : > { %s2071_s16 = scalar_select %p1709_p13, 1, 0 }
  0x62   : > { %s257_s27 = sadd.s32 %s1417_s14, %s775_s19  ;;  %s261_s5 = sshll.u32 %s252_s6, 4  ;;  %s1716_s5 = int_to_ptr.vmem [resolvable:$true] %s261_s5 }
  0x63   : > { %s776_s24 = sshll.u32 %s257_s27, 7  ;;  %s2072_s0 = sld [smem:[#allocation29_spill]] }
  0x64   : > { %p2073_p1 = scmp.lt.s32.totalorder %s1421_s15, 16  ;;  %s781_s28 = sshll.u32 %s1409_s12, 7 }
  0x65   : > { %s249_s18 = scalar_lea.sflag [#allocation4], %s248_s9 }
  0x66   : > { %p1727_p4 = pnand %p2073_p1, %p1646_p6 }
  0x68   : > { %p1169_p11 = pneg %p1727_p4 }
  0x69   : > { %s1721_s7 = scalar_lea.hbm %s2072_s0, %s776_s24  ;;  %s1172_s2 = scalar_lea.hbm %s2072_s0, 1024 }
  0x6a   : > { %s1167_s19 = scalar_lea.hbm %s1721_s7, 128  ;;  %p1173_p6 = scmp.lt.u32.totalorder %s1721_s7, %s2072_s0 }
  0x6b   : > { %p1168_p10 = scmp.ne.s32.totalorder %s1721_s7, %s1167_s19  ;;  %p1174_p1 = scmp.lt.u32.totalorder %s1172_s2, %s1167_s19 }
  0x6c   : > { %p1176_p3 = scmp.lt.u32.totalorder %s1167_s19, %s1721_s7 }
  0x6d   : > { %p1170_p5 = pnand %p1169_p11, %p1168_p10  ;;  %p1175_p13 = por %p1174_p1, %p1173_p6 }
  0x6f   : > { %p1171_p0 = pneg %p1170_p5  ;;  %p1177_p9 = por %p1176_p3, %p1175_p13 }
  0x71   : > { %p1178_p12 = pnand %p1177_p9, %p1171_p0 }
  0x73   : > { %1181 = shalt.err (!%p1178_p12)
}
  0x74   : > { %s1182_s9 = scalar_lea.vmem %s1716_s5, 128  ;;  %s1426_s24 = smov [#allocation3]  }
  0x75   : > { %p1183_p10 = scmp.ne.s32.totalorder %s1716_s5, %s1182_s9  ;;  %s1187_s10 = sshll.u32 %s1426_s24, 4  ;;  %s1188_s10 = int_to_ptr.vmem [resolvable:$false] %s1187_s10 }
  0x76   : > { %s1189_s4 = scalar_lea.vmem %s1188_s10, 256  ;;  %p1190_p7 = scmp.lt.s32.totalorder %s1716_s5, %s1188_s10 }
  0x77   : > { %p1185_p5 = pnand %p1183_p10, %p1169_p11  ;;  %p1191_p6 = scmp.lt.s32.totalorder %s1189_s4, %s1182_s9 }
  0x79   : > { %p1186_p8 = pneg %p1185_p5  ;;  %p1192_p1 = por %p1191_p6, %p1190_p7 }
  0x7b   : > { %p1193_p3 = pnand %p1192_p1, %p1186_p8 }
  0x7d   : > { %1196 = shalt.err (!%p1193_p3)
}
  0x7e   : > { %961 = dma.hbm_to_vmem [thread:$0]  (!%p1727_p4), %s1721_s7, 128, %s1716_s5, %s249_s18  }
  0x7f   : > { %s173_s19 = sadd.s32 1, %s1369_s26  ;;  %p180_p0 = scmp.ne.s32.totalorder %s1369_s26, %s1365_s25 }
  0x80   : > { %s1763_s2 = scalar_select %p1668_p2, %s1369_s26, %s173_s19  }
  0x81   : > { %p2075_p7 = scmp.eq.s32.totalorder %s1421_s15, 0  ;;  %s297_s20 = sand.u32 1, %s1369_s26  }
  0x82   : > { %s780_s27 = sshll.u32 %s297_s20, 7  ;;  %s2076_s24 = sld [smem:[#allocation34_spill]] }
  0x83   : > { %p182_p8 = por %p180_p0, %p2075_p7  ;;  %p2078_p12 = scmp.lt.s32.totalorder %s1421_s15, 16 }
  0x84   : > { %s299_s1 = scalar_lea.vmem [#allocation8], %s780_s27 }
  0x85   : > { %p1777_p9 = pnand %p2078_p12, %p182_p8  ;;  %s305_s5 = sshll.u32 %s299_s1, 4  ;;  %s1781_s5 = int_to_ptr.vmem [resolvable:$true] %s305_s5 }
  0x87   : > { %p1199_p13 = pneg %p1777_p9 }
  0x88   : > { %s2077_s4 = smov %s2076_s24  ;;  %s1773_s10 = scalar_lea.hbm %s2076_s24, %s781_s28 }
  0x89   : > { %s1197_s18 = scalar_lea.hbm %s1773_s10, 2048  ;;  %s1202_s20 = scalar_lea.hbm %s2077_s4, 4096 }
  0x8a   : > { %p1198_p2 = scmp.ne.s32.totalorder %s1773_s10, %s1197_s18  ;;  %p1203_p10 = scmp.lt.u32.totalorder %s1773_s10, %s2077_s4 }
  0x8b   : > { %p1204_p5 = scmp.lt.u32.totalorder %s1202_s20, %s1197_s18  ;;  %p1206_p1 = scmp.lt.u32.totalorder %s1197_s18, %s1773_s10 }
  0x8c   : > { %p1200_p4 = pnand %p1199_p13, %p1198_p2 }
  0x8d   : > { %p1205_p6 = por %p1204_p5, %p1203_p10 }
  0x8e   : > { %p1201_p11 = pneg %p1200_p4 }
  0x8f   : > { %p1207_p3 = por %p1206_p1, %p1205_p6 }
  0x91   : > { %p1208_p0 = pnand %p1207_p3, %p1201_p11 }
  0x93   : > { %1211 = shalt.err (!%p1208_p0)
}
  0x94   : > { %s1212_s27 = scalar_lea.vmem %s1781_s5, 2048  ;;  %s1427_s24 = smov [#allocation8]  }
  0x95   : > { %p1213_p7 = scmp.ne.s32.totalorder %s1781_s5, %s1212_s27  ;;  %s1217_s1 = sshll.u32 %s1427_s24, 4  ;;  %s1218_s1 = int_to_ptr.vmem [resolvable:$false] %s1217_s1 }
  0x96   : > { %s1219_s28 = scalar_lea.vmem %s1218_s1, 4096  ;;  %p1220_p2 = scmp.lt.s32.totalorder %s1781_s5, %s1218_s1 }
  0x97   : > { %p1215_p8 = pnand %p1213_p7, %p1199_p13  ;;  %p1221_p4 = scmp.lt.s32.totalorder %s1219_s28, %s1212_s27 }
  0x99   : > { %p1216_p12 = pneg %p1215_p8  ;;  %p1222_p10 = por %p1221_p4, %p1220_p2 }
  0x9b   : > { %p1223_p5 = pnand %p1222_p10, %p1216_p12 }
  0x9d   : > { %1226 = shalt.err (!%p1223_p5)
}
  0x9e   : > { %s1428_s18 = smov 256   ;;  %s2080_s19 = smov 8  }
  0x9f   : > { %s2081_s20 = smov 128   ;;  %s2082_s6 = sld [smem:[#allocation20_spill]] }
  0xa0   : > { %s2083_s9 = sld [smem:[#allocation21_spill]] }
  0xa5   : > { %967 = dma.hbm_to_vmem [thread:$0]  (!%p1777_p9), %s1773_s10, 2048, %s1781_s5, %s2082_s6, %s1428_s18, %s2081_s20, %s2080_s19  }
  0xa6   : > { %p2084_p13 = scmp.ne.s32.totalorder %s2083_s9, 0 }
  0xa7   : > { %s2085_s24 = sld [smem:[#allocation15_spill]] (!%p2084_p13)  ;;  %s2086_s0 = sld [smem:[#allocation24_spill]] (!%p2084_p13) }
  0xa8   : > { %317 = sbr.rel (%p2084_p13) target bundleno = 1059 (0x423), region = 44 }
  0xad   : > { %s319_s4 = sand.u32 (!%p2084_p13), 1, %s2085_s24   ;;  %p2087_p11 = scmp.ne.s32.totalorder (!%p2084_p13), %s2086_s0, 0 }
  0xae   : > { %s1814_s1 = sshll.u32 (!%p2084_p13), %s319_s4, 3  ;;  %s320_s27 = scalar_lea.sflag (!%p2084_p13), [#allocation4], %s319_s4 }
  0xaf   : > { %s323_s28 = scalar_lea.vmem [#allocation3], %s1814_s1 }
  0xb0   : > { %1332 = dma.done.wait (%p2087_p11), %s320_s27, 128  }
  0xb1   : > { %1334 = vsyncadd (%p2087_p11), %s320_s27, 4294967168  ;;  %s2088_s7 = sld [smem:[#allocation14_spill]]  ;;  %s2089_s14 = sld [smem:[#allocation25_spill]] }
  0xb2   : > { %s328_s10 = sand.u32 1, %s1629_s17  }
  0xb3   : > { %s329_s19 = scalar_lea.sflag [#allocation7], %s328_s10 }
  0xb7   : > { %s330_s5 = sand.u32 1, %s2088_s7   ;;  %p2090_p9 = scmp.ne.s32.totalorder %s2089_s14, 0 }
  0xb8   : > { %s784_s18 = sshll.u32 %s330_s5, 7 }
  0xb9   : > { %s1823_s20 = scalar_lea.vmem [#allocation6], %s784_s18 }
  0xba   : > { %1336 = dma.done.wait (%p2090_p9), %s329_s19, 2048  }
  0xbb   : > { %1338 = vsyncadd (%p2090_p9), %s329_s19, 4294965248  ;;  %s2091_s4 = sld [smem:[#allocation27_spill]]  ;;  %s339_s6 = sand.u32 1, %s1365_s25  }
  0xbc   : > { %s785_s9 = sshll.u32 %s339_s6, 7 }
  0xbd   : > { %s1830_s0 = scalar_lea.vmem [#allocation8], %s785_s9 }
  0xc1   : > { %p2092_p6 = scmp.ne.s32.totalorder %s2091_s4, 0 }
  0xc3   : > { %1340 = dma.done.wait (%p2092_p6), %s329_s19, 2048  }
  0xc4   : > { %1342 = vsyncadd (%p2092_p6), %s329_s19, 4294965248  ;;  %s2093_s17 = sld [smem:[#allocation18_spill]]  ;;  %s2033_s24 = sand.u32 1, %s1353_s22  }
  0xc5   : > { %s1840_s14 = sshll.u32 %s2033_s24, 3  ;;  %s2094_s10 = sld [smem:[#allocation31_spill]] }
  0xc6   : > { %s382_s18 = scalar_lea.vmem [#allocation9], %s1840_s14  ;;  %s2095_s4 = sld [smem:[#allocation16_spill]] }
  0xca   : > { %p383_p1 = scmp.lt.s32.totalorder %s2093_s17, 3 }
  0xcc   : > { %s2142_s17 = smov (!%p383_p1, %s2093_s17), 3  ;;  %p787_p3 = scmp.ne.s32.totalorder %s2095_s4, 0 }
  0xcd   : > { %s385_s5 = scalar_lea.vmem %s2094_s10, %s2142_s17  ;;  %v393_v0 = vld [vmem:[%s1823_s20] sm:$0xff] (!%p787_p3)  ;;  %v394_v1 = vld [vmem:[%s1823_s20 + $0x8] sm:$0xff] (!%p787_p3)  ;;  %v1429_v2 = vmov (!%p787_p3), 0.0|0.0   ;;  %vm1430_vm0 = vmmov (!%p787_p3), 0   ;;  %v1431_v4 = vmov (!%p787_p3), 0.0   ;;  %v395_v5 = vld [vmem:[%s1823_s20 + $0x10] sm:$0xff] (!%p787_p3) }
  0xce   : > { %391 = sbr.rel (%p787_p3) target bundleno = 799 (0x31f), region = 60  ;;  %902 = vmatprep.subr.bf16.mxu0 (!%p787_p3), %v1429_v2  ;;  %v903_v3 = vpack.c.bf16 (!%p787_p3), %v394_v1, %v393_v0  ;;  %864 = vmatprep.mubr.msk.f32.mxu0 (!%p787_p3), %vm1430_vm0, %v1431_v4  ;;  %v396_v6 = vld [vmem:[%s1823_s20 + $0x18] sm:$0xff] (!%p787_p3)  ;;  %v397_v8 = vld [vmem:[%s1823_s20 + $0x20] sm:$0xff] (!%p787_p3)  ;;  %v398_v9 = vld [vmem:[%s1823_s20 + $0x28] sm:$0xff] (!%p787_p3)  ;;  %s2098_s7 = sld [smem:[#allocation33_spill]] (!%p787_p3) }
  0xcf   : > { %v906_v7 = vpack.c.bf16 (!%p787_p3), %v396_v6, %v395_v5  ;;  %v909_v10 = vpack.c.bf16 (!%p787_p3), %v398_v9, %v397_v8  ;;  %v399_v11 = vld [vmem:[%s1823_s20 + $0x30] sm:$0xff] (!%p787_p3)  ;;  %v400_v12 = vld [vmem:[%s1823_s20 + $0x38] sm:$0xff] (!%p787_p3)  ;;  %v401_v14 = vld [vmem:[%s1823_s20 + $0x40] sm:$0xff] (!%p787_p3) }
  0xd0   : > { %904 = vmatpush3.bf16.xpose.msra.mxu0 (!%p787_p3), %v903_v3  ;;  %v912_v13 = vpack.c.bf16 (!%p787_p3), %v400_v12, %v399_v11  ;;  %v402_v15 = vld [vmem:[%s1823_s20 + $0x48] sm:$0xff] (!%p787_p3)  ;;  %v403_v17 = vld [vmem:[%s1823_s20 + $0x50] sm:$0xff] (!%p787_p3)  ;;  %v404_v18 = vld [vmem:[%s1823_s20 + $0x58] sm:$0xff] (!%p787_p3) }
  0xd1   : > { %905 = vmatprep.subr.bf16.mxu0 (!%p787_p3), %v1429_v2  ;;  %v915_v16 = vpack.c.bf16 (!%p787_p3), %v402_v15, %v401_v14  ;;  %v918_v19 = vpack.c.bf16 (!%p787_p3), %v404_v18, %v403_v17  ;;  %v405_v20 = vld [vmem:[%s1823_s20 + $0x60] sm:$0xff] (!%p787_p3)  ;;  %v406_v21 = vld [vmem:[%s1823_s20 + $0x68] sm:$0xff] (!%p787_p3)  ;;  %v407_v23 = vld [vmem:[%s1823_s20 + $0x70] sm:$0xff] (!%p787_p3) }
  0xd2   : > { %v921_v22 = vpack.c.bf16 (!%p787_p3), %v406_v21, %v405_v20  ;;  %v408_v24 = vld [vmem:[%s1823_s20 + $0x78] sm:$0xff] (!%p787_p3)  ;;  %v788_v28 = vld [vmem:[%s385_s5] ss:$0 sm:$0xff] (!%p787_p3)  ;;  %s2097_s20 = sld [smem:[#allocation32_spill]] (!%p787_p3) }
  0xd3   : > { %v924_v25 = vpack.c.bf16 (!%p787_p3), %v408_v24, %v407_v23  ;;  %v392_v26 = vld [vmem:[%s323_s28] sm:$0xff] (!%p787_p3) }
  0xd4   : > { %v790_v42 = vld [vmem:[%s2098_s7] ss:$0 sm:$0xff] (!%p787_p3) }
  0xd8   : > { %907 = vmatpush3.bf16.xpose.msra.mxu0 %v906_v7  ;;  %v789_v40 = vld [vmem:[%s2097_s20] ss:$0 sm:$0xff] }
  0xd9   : > { %908 = vmatprep.subr.bf16.mxu0 %v1429_v2 }
  0xe0   : > { %910 = vmatpush3.bf16.xpose.msra.mxu0 %v909_v10 }
  0xe1   : > { %911 = vmatprep.subr.bf16.mxu0 %v1429_v2 }
  0xe8   : > { %913 = vmatpush3.bf16.xpose.msra.mxu0 %v912_v13 }
  0xe9   : > { %914 = vmatprep.subr.bf16.mxu0 %v1429_v2 }
  0xf0   : > { %916 = vmatpush3.bf16.xpose.msra.mxu0 %v915_v16 }
  0xf1   : > { %917 = vmatprep.subr.bf16.mxu0 %v1429_v2 }
  0xf8   : > { %919 = vmatpush3.bf16.xpose.msra.mxu0 %v918_v19 }
  0xf9   : > { %920 = vmatprep.subr.bf16.mxu0 %v1429_v2 }
 0x100   : > { %922 = vmatpush3.bf16.xpose.msra.mxu0 %v921_v22 }
 0x101   : > { %923 = vmatprep.subr.bf16.mxu0 %v1429_v2 }
 0x108   : > { %925 = vmatpush3.bf16.xpose.msra.mxu0 %v924_v25 }
 0x10f   : > { %865 = vmatmul.mubr.f32.vlgmr.msra.gmra.mrb[0].mxu0 %v392_v26 }
 0x1e2   : > { %v475_v27 = vpop.f32.mrb[0].mxu0 }
 0x1e3   : > { %v479_v29 = vadd.f32 %v475_v27, %v392_v26  ;;  %v866_v30 = vpop.f32.mrb[1].mxu0 }
 0x1e5   : > { %v487_v31 = vadd.f32 %v788_v28, %v479_v29 }
 0x1e7   : > { %488 = vadd.xlane.f32.xlu0 %v487_v31 }
 0x274   : > { %v489_v32 = vpop.xlane.xlu0 %488 }
 0x275   : > { %v491_v33 = vmul.f32 0.0078125, %v489_v32 }
 0x277   : > { %v492_v34 = vsub.f32 %v487_v31, %v491_v33 }
 0x279   : > { %v493_v35 = vmul.f32 %v492_v34, %v492_v34 }
 0x27b   : > { %494 = vadd.xlane.f32.xlu0 %v493_v35 }
 0x308   : > { %v495_v36 = vpop.xlane.xlu0 %494 }
 0x309   : > { %v496_v37 = vmul.f32 0.0078125, %v495_v36 }
 0x30b   : > { %v497_v38 = vadd.f32 1e-05, %v496_v37 }
 0x30d   : > { %1135 = vrsqrt.f32 %v497_v38 }
 0x317   : > { %v1136_v39 = vpop.eup %1135 }
 0x318   : > { %v499_v41 = vmul.f32 %v1136_v39, %v492_v34 }
 0x31a   : > { %v507_v43 = vmul.f32 %v789_v40, %v499_v41 }
 0x31c   : > { %v515_v44 = vadd.f32 %v790_v42, %v507_v43 }
 0x31e   : > { %516 = vst [vmem:[#allocation2] sm:$0xff] %v515_v44 }
 0x31f PF: > { %v518_v45 = vld [vmem:[%s1830_s0] sm:$0xff]  ;;  %v519_v46 = vld [vmem:[%s1830_s0 + $0x8] sm:$0xff]  ;;  %v520_v47 = vld [vmem:[%s1830_s0 + $0x10] sm:$0xff]  ;;  %v1432_v48 = vmov 0.0|0.0   ;;  %vm1433_vm1 = vmmov 0   ;;  %v1434_v51 = vmov 0.0  }
 0x320   : > { %926 = vmatprep.subr.bf16.mxu0 %v1432_v48  ;;  %v927_v49 = vpack.c.bf16 %v519_v46, %v518_v45  ;;  %v521_v50 = vld [vmem:[%s1830_s0 + $0x18] sm:$0xff]  ;;  %899 = vmatprep.mubr.msk.f32.mxu0 %vm1433_vm1, %v1434_v51  ;;  %v522_v53 = vld [vmem:[%s1830_s0 + $0x20] sm:$0xff]  ;;  %v523_v54 = vld [vmem:[%s1830_s0 + $0x28] sm:$0xff]  ;;  %s2099_s10 = sld [smem:[#allocation18_spill]]  ;;  %s2100_s5 = sld [smem:[#allocation16_spill]] }
 0x321   : > { %v930_v52 = vpack.c.bf16 %v521_v50, %v520_v47  ;;  %v933_v55 = vpack.c.bf16 %v523_v54, %v522_v53  ;;  %v524_v56 = vld [vmem:[%s1830_s0 + $0x30] sm:$0xff]  ;;  %v525_v57 = vld [vmem:[%s1830_s0 + $0x38] sm:$0xff]  ;;  %v526_v59 = vld [vmem:[%s1830_s0 + $0x40] sm:$0xff]  ;;  %s2101_s4 = sld [smem:[#allocation17_spill]]  ;;  %s623_s20 = sshll.u32 %s382_s18, 4  ;;  %s1906_s20 = int_to_ptr.vmem [resolvable:$true] %s623_s20 }
 0x322   : > { %928 = vmatpush3.bf16.msra.mxu0 %v927_v49  ;;  %v936_v58 = vpack.c.bf16 %v525_v57, %v524_v56  ;;  %v527_v60 = vld [vmem:[%s1830_s0 + $0x48] sm:$0xff]  ;;  %v528_v62 = vld [vmem:[%s1830_s0 + $0x50] sm:$0xff]  ;;  %v529_v63 = vld [vmem:[%s1830_s0 + $0x58] sm:$0xff]  ;;  %s2102_s7 = sld [smem:[#allocation35_spill]]  ;;  %p2105_p7 = scmp.ne.s32.totalorder %s2069_s11, 0 }
 0x323   : > { %929 = vmatprep.subr.bf16.mxu0 %v1432_v48  ;;  %v939_v61 = vpack.c.bf16 %v527_v60, %v526_v59  ;;  %v942_v0 = vpack.c.bf16 %v529_v63, %v528_v62  ;;  %v530_v1 = vld [vmem:[%s1830_s0 + $0x60] sm:$0xff]  ;;  %v531_v2 = vld [vmem:[%s1830_s0 + $0x68] sm:$0xff]  ;;  %v532_v4 = vld [vmem:[%s1830_s0 + $0x70] sm:$0xff] }
 0x324   : > { %v945_v3 = vpack.c.bf16 %v531_v2, %v530_v1  ;;  %v533_v5 = vld [vmem:[%s1830_s0 + $0x78] sm:$0xff] }
 0x325   : > { %v948_v6 = vpack.c.bf16 %v533_v5, %v532_v4  ;;  %v517_v7 = vld [vmem:[#allocation2] sm:$0xff] }
 0x326   : > { %931 = vmatpush3.bf16.msra.mxu0 %v930_v52  ;;  %s792_s19 = sshll.u32 %s2099_s10, 1  ;;  %s2104_s10 = sand.u32 1, %s1353_s22  }
 0x327   : > { %932 = vmatprep.subr.bf16.mxu0 %v1432_v48  ;;  %s614_s6 = sadd.s32 %s2100_s5, %s792_s19  ;;  %s793_s9 = sshll.u32 %s2101_s4, 3 }
 0x328   : > { %s619_s1 = sadd.s32 %s793_s9, %s614_s6  ;;  %s2103_s24 = smov %s2102_s7 }
 0x329   : > { %s794_s28 = sshll.u32 %s619_s1, 7  ;;  %s606_s5 = scalar_lea.sflag [#allocation5], %s2104_s10 }
 0x32a   : > { %934 = vmatpush3.bf16.msra.mxu0 %v933_v55  ;;  %s1904_s0 = scalar_lea.hbm %s2102_s7, %s794_s28  ;;  %s1227_s4 = scalar_lea.vmem %s1906_s20, 128 }
 0x32b   : > { %935 = vmatprep.subr.bf16.mxu0 %v1432_v48  ;;  %p1228_p0 = scmp.ne.s32.totalorder %s1906_s20, %s1227_s4  ;;  %s1435_s19 = smov [#allocation9]  }
 0x32c   : > { %s1231_s6 = sshll.u32 %s1435_s19, 4  ;;  %s1232_s6 = int_to_ptr.vmem [resolvable:$false] %s1231_s6 }
 0x32d   : > { %p1229_p8 = pnand %p1228_p0, %p2105_p7  ;;  %s1233_s9 = scalar_lea.vmem %s1232_s6, 256 }
 0x32e   : > { %937 = vmatpush3.bf16.msra.mxu0 %v936_v58  ;;  %p1234_p2 = scmp.lt.s32.totalorder %s1906_s20, %s1232_s6  ;;  %p1235_p4 = scmp.lt.s32.totalorder %s1233_s9, %s1227_s4 }
 0x32f   : > { %938 = vmatprep.subr.bf16.mxu0 %v1432_v48  ;;  %p1230_p12 = pneg %p1229_p8 }
 0x330   : > { %p1236_p10 = por %p1235_p4, %p1234_p2 }
 0x332   : > { %940 = vmatpush3.bf16.msra.mxu0 %v939_v61  ;;  %p1237_p5 = pnand %p1236_p10, %p1230_p12 }
 0x333   : > { %941 = vmatprep.subr.bf16.mxu0 %v1432_v48 }
 0x336   : > { %943 = vmatpush3.bf16.msra.mxu0 %v942_v0 }
 0x337   : > { %944 = vmatprep.subr.bf16.mxu0 %v1432_v48 }
 0x33a   : > { %946 = vmatpush3.bf16.msra.mxu0 %v945_v3 }
 0x33b   : > { %947 = vmatprep.subr.bf16.mxu0 %v1432_v48 }
 0x33e   : > { %949 = vmatpush3.bf16.msra.mxu0 %v948_v6 }
 0x341   : > { %900 = vmatmul.mubr.f32.vlgmr.msra.gmra.mrb[0].mxu0 %v517_v7 }
 0x414   : > { %v600_v8 = vpop.f32.mrb[0].mxu0 }
 0x415   : > { %604 = vst [vmem:[%s382_s18] sm:$0xff] %v600_v8  ;;  %v901_v9 = vpop.f32.mrb[1].mxu0 }
 0x416   : > { %1240 = shalt.err (!%p1237_p5)
}
 0x417   : > { %s1241_s14 = scalar_lea.hbm %s1904_s0, 128  ;;  %s1245_s28 = scalar_lea.hbm %s2103_s24, 2048 }
 0x418   : > { %p1242_p13 = scmp.ne.s32.totalorder %s1904_s0, %s1241_s14  ;;  %p1246_p6 = scmp.lt.u32.totalorder %s1904_s0, %s2103_s24 }
 0x419   : > { %p1247_p1 = scmp.lt.u32.totalorder %s1245_s28, %s1241_s14  ;;  %p1249_p0 = scmp.lt.u32.totalorder %s1241_s14, %s1904_s0 }
 0x41a   : > { %p1243_p11 = pnand %p1242_p13, %p2105_p7 }
 0x41b   : > { %p1248_p3 = por %p1247_p1, %p1246_p6 }
 0x41c   : > { %p1244_p9 = pneg %p1243_p11 }
 0x41d   : > { %p1250_p8 = por %p1249_p0, %p1248_p3 }
 0x41f   : > { %p1251_p12 = pnand %p1250_p8, %p1244_p9 }
 0x421   : > { %1254 = shalt.err (!%p1251_p12)
}
 0x422   : > { %956 = dma.vmem_to_hbm [thread:$0]  (%p2105_p7), %s1906_s20, 128, %s1904_s0, %s606_s5  }
 0x423 PF: > { %p973_p2 = scmp.ge.s32.totalorder %s1421_s15, 2  ;;  %s635_s7 = sand.u32 1, %s1349_s21  }
 0x424   : > { %p2106_p4 = scmp.ne.s32.totalorder %s2071_s16, 0  ;;  %s636_s10 = scalar_lea.sflag [#allocation5], %s635_s7 }
 0x426   : > { %p969_p10 = pnand %p973_p2, %p2106_p4 }
 0x428   : > { %1344 = dma.done.wait (!%p969_p10), %s636_s10, 128  }
 0x429   : > { %1346 = vsyncadd (!%p969_p10), %s636_s10, 4294967168  ;;  %s25_s15 = sadd.s32 1, %s1421_s15   ;;  %s2108_s27 = sld [smem:[#allocation14_spill]] }
 0x42a   : > { %p1938_p5 = scmp.ge.s32.totalorder %s25_s15, 18   ;;  %s2109_s11 = sld [smem:[#allocation15_spill]] }
 0x42b   : > { %s2110_s16 = sld [smem:[#allocation28_spill]]  ;;  %s2111_s20 = sld [smem:[#allocation19_spill]] }
 0x42c   : > { %s2112_s0 = sld [smem:[#allocation22_spill]]  ;;  %s2113_s21 = smov %s1353_s22 }
 0x42d   : > { %s2114_s5 = sld [smem:[#allocation23_spill]]  ;;  %s2115_s22 = smov %s1357_s23 }
 0x42e   : > { %s2116_s14 = sld [smem:[#allocation26_spill]]  ;;  %s2117_s23 = smov %s1707_s3 }
 0x42f   : > { %2118 = sst [smem:[#allocation14_spill]] %s1365_s25  ;;  %s2119_s25 = smov %s1369_s26 }
 0x430   : > { %s2120_s26 = smov %s1763_s2  ;;  %s2121_s28 = smov %s1381_s29 }
 0x431   : > { %s2122_s29 = smov %s1688_s30  ;;  %s2123_s30 = smov %s2109_s11 }
 0x432   : > { %s2124_s7 = smov %s1393_s8  ;;  %s2125_s8 = smov %s2110_s16 }
 0x433   : > { %s2126_s9 = smov %s1409_s12  ;;  %s2127_s10 = smov %s1413_s13 }
 0x434   : > { %s2128_s11 = smov %s2111_s20  ;;  %s2129_s12 = smov %s2112_s0 }
 0x435   : > { %s2130_s13 = smov %s2114_s5  ;;  %24 = sbr.rel (!%p1938_p5) target bundleno = 23 (0x17), region = 120 }
 0x43c   :  { %641 = vsyncpa [#allocation4], 1 }
 0x43d   :  { %643 = vsyncpa [#allocation4 + $0x1], 1 }
 0x43e   :  { %644 = vsyncpa [#allocation7], 1 }
 0x43f   :  { %646 = vsyncpa [#allocation7 + $0x1], 1 }
 0x440   :  { %647 = vsyncpa [#allocation5], 1 }
 0x441   :  { %649 = vsyncpa [#allocation5 + $0x1], 1 }

</bundles_post_ra>
